<compile_context>
chip_gen: v7x
topology: tpu7x:2x2x1
jax: 0.10.0
libtpu: 0.0.40
codegen_flags: <defaults>
</compile_context>

<pallas_src>
import functools

import jax
import jax.numpy as jnp
from jax.experimental import pallas as pl
from jax.experimental.pallas import tpu as pltpu

C_PAD = 8  # per-tap channel rows after padding: 3 data + 1 ones(bias) + 4 zeros


def _conv_kernel(x_ref, w_ref, o_ref, *, kh_taps, kw_taps, img_w, hw):
    """One image per grid step.

    x_ref: (C_PAD, H*W)        channels padded to 8; channel 3 is all-ones (bias carrier)
    w_ref: (KH, OC, KW*C_PAD)  packed im2col weight (bias folded into the kh=0 slice)
    o_ref: (OC, H*W)           output slab; valid entries sit at oh*W + ow
    """
    x = x_ref[...]
    acc = jnp.zeros(o_ref.shape, jnp.float32)
    for kh in range(kh_taps):
        # One lane rotation per kw tap; rolling right by (hw - s) == left shift by s.
        # Wrapped / cross-row lanes only ever land at invalid output positions
        # (ow >= OW or oh >= OH), which the wrapper slices away.
        taps = []
        for kw in range(kw_taps):
            s = kh * img_w + kw
            taps.append(x if s == 0 else pltpu.roll(x, hw - s, axis=1))
        stack = jnp.concatenate(taps, axis=0)            # (KW*C_PAD, H*W), sublane-aligned
        acc = acc + jnp.dot(w_ref[kh], stack, preferred_element_type=jnp.float32)
    o_ref[...] = acc.astype(o_ref.dtype)


def _pack_weight(weight, bias):
    """(OC, C, KH, KW) + (OC,) -> (KH, OC, KW*C_PAD) with bias folded in (runs once at init)."""
    OC, C, KH, KW = weight.shape
    wt = jnp.transpose(weight.astype(jnp.float32), (2, 0, 3, 1))       # (KH, OC, KW, C)
    wt = jnp.pad(wt, ((0, 0), (0, 0), (0, 0), (0, C_PAD - C)))         # (KH, OC, KW, C_PAD)
    # bias multiplies the all-ones padded channel of the un-shifted tap (kh=0, kw=0)
    wt = wt.at[0, :, 0, C].set(bias.astype(jnp.float32))
    return wt.reshape(KH, OC, KW * C_PAD)


@jax.jit
def _conv2d_valid_pallas(x_nchw, w_packed):
    """stride=1 / padding=0 conv. x: (N, C, H, W); w_packed: (KH, OC, KW*C_PAD)."""
    N, C, H, W = x_nchw.shape
    KH, OC, KWC = w_packed.shape
    KW = KWC // C_PAD
    OH, OW = H - KH + 1, W - KW + 1
    HW = H * W
    assert H >= KH and W >= KW, "valid conv requires H >= KH and W >= KW"

    # Layout glue (tiny, fused under this jit): free reshape + channel pad to
    # C_PAD sublane rows; padded channel C is all-ones so the bias rides the MXU.
    x3 = x_nchw.astype(jnp.float32).reshape(N, C, HW)
    ones = jnp.ones((N, 1, HW), jnp.float32)
    zeros = jnp.zeros((N, C_PAD - C - 1, HW), jnp.float32)
    xp = jnp.concatenate([x3, ones, zeros], axis=1)                    # (N, C_PAD, HW)

    kernel = functools.partial(_conv_kernel, kh_taps=KH, kw_taps=KW, img_w=W, hw=HW)

    # NOTE: for large H*W the whole-image block should be split into row chunks
    # with a (KH-1)-row halo per block (keeps the roll trick valid) to bound
    # VMEM on v7x; unnecessary at these sizes.
    out = pl.pallas_call(
        kernel,
        out_shape=jax.ShapeDtypeStruct((N, OC, HW), jnp.float32),
        grid_spec=pltpu.PrefetchScalarGridSpec(
            num_scalar_prefetch=0,
            grid=(N,),                                    # one image per step
            in_specs=[
                pl.BlockSpec((None, C_PAD, HW), lambda n: (n, 0, 0)),
                pl.BlockSpec((KH, OC, KWC), lambda n: (0, 0, 0)),
            ],
            out_specs=pl.BlockSpec((None, OC, HW), lambda n: (n, 0, 0)),
        ),
        compiler_params=pltpu.CompilerParams(
            dimension_semantics=("parallel",),            # dual-TC on v7x
            vmem_limit_bytes=32 * 1024 * 1024,            # tiny blocks; safe on v5e/v6e/v7x
        ),
    )(xp, w_packed)

    # Valid conv outputs sit at flat lane positions oh*W + ow, i.e. the slab is
    # already NCHW-ordered: free reshape + the single final border slice.
    return out.reshape(N, OC, H, W)[:, :, :OH, :OW]


class TuduiPallas:
    """Mirror of the PyTorch module: a single Conv2d(3, 6, 3, stride=1, padding=0)."""

    def __init__(self, key):
        kw_key, kb_key = jax.random.split(key)
        OC, IC, KH, KW = 6, 3, 3, 3
        fan_in = IC * KH * KW
        bound = 1.0 / float(jnp.sqrt(fan_in))   # matches torch Conv2d default init bound
        self.weight = jax.random.uniform(kw_key, (OC, IC, KH, KW),
                                         minval=-bound, maxval=bound, dtype=jnp.float32)
        self.bias = jax.random.uniform(kb_key, (OC,),
                                       minval=-bound, maxval=bound, dtype=jnp.float32)
        # Packed im2col weight (bias folded) built once at init, not per forward call.
        self.w_packed = _pack_weight(self.weight, self.bias)

    def __call__(self, x):
        return _conv2d_valid_pallas(x, self.w_packed)


if __name__ == "__main__":
    key = jax.random.PRNGKey(0)
    k_param, k_x = jax.random.split(key)

    model = TuduiPallas(k_param)

    # Small NCHW input consistent with Conv2d(in_channels=3, ...)
    x = jax.random.normal(k_x, (2, 3, 16, 16), dtype=jnp.float32)

    out = jax.block_until_ready(model(x))
    assert out.shape == (2, 6, 14, 14), out.shape

    # Cross-check against XLA's native conv for correctness.
    ref = jax.lax.conv_general_dilated(
        x, model.weight, window_strides=(1, 1), padding="VALID",
        dimension_numbers=("NCHW", "OIHW", "NCHW"),
    ) + model.bias.reshape(1, -1, 1, 1)
    ref = jax.block_until_ready(ref)
    assert jnp.allclose(out, ref, atol=1e-4, rtol=1e-4), (
        float(jnp.max(jnp.abs(out - ref))))

    print("KERNEL_OK")
</pallas_src>

<mosaic_0001>
module attributes {stable_mosaic.version = 11 : i64} {
  func.func @_conv_kernel(%arg0: i32, %arg1: memref<1x8x256xf32, #tpu.memory_space<vmem>>, %arg2: memref<3x6x24xf32, #tpu.memory_space<vmem>>, %arg3: memref<1x6x256xf32, #tpu.memory_space<vmem>>) attributes {dimension_semantics = [#tpu.dimension_semantics<parallel>], iteration_bounds = array<i64: 2>, scalar_prefetch = 0 : i64, scratch_operands = 0 : i64, tpu.core_type = #tpu.core_type<tc>, window_params = [{transform_indices = @transform_0, window_bounds = array<i64: 1, 8, 256>}, {pipeline_mode = #tpu.pipeline_mode<synchronous>, transform_indices = @transform_1, window_bounds = array<i64: 3, 6, 24>}, {transform_indices = @transform_2, window_bounds = array<i64: 1, 6, 256>}]} {
    %c0 = arith.constant 0 : index
    %c0_0 = arith.constant 0 : index
    %c0_1 = arith.constant 0 : index
    %0 = vector.load %arg1[%c0, %c0_0, %c0_1] : memref<1x8x256xf32, #tpu.memory_space<vmem>>, vector<1x8x256xf32>
    %1 = vector.shape_cast %0 : vector<1x8x256xf32> to vector<8x256xf32>
    %cst = arith.constant 0.000000e+00 : f32
    %2 = vector.broadcast %cst : f32 to vector<6x256xf32>
    %c255_i32 = arith.constant 255 : i32
    %3 = tpu.dynamic_rotate %1 by %c255_i32 dim 1 : vector<8x256xf32>, i32 -> vector<8x256xf32>
    %c254_i32 = arith.constant 254 : i32
    %4 = tpu.dynamic_rotate %1 by %c254_i32 dim 1 : vector<8x256xf32>, i32 -> vector<8x256xf32>
    %5 = tpu.concatenate %1, %3, %4 in 0 : vector<8x256xf32>, vector<8x256xf32>, vector<8x256xf32> -> vector<24x256xf32>
    %c0_2 = arith.constant 0 : index
    %c0_3 = arith.constant 0 : index
    %c0_4 = arith.constant 0 : index
    %6 = vector.load %arg2[%c0_2, %c0_3, %c0_4] : memref<3x6x24xf32, #tpu.memory_space<vmem>>, vector<1x6x24xf32>
    %7 = vector.shape_cast %6 : vector<1x6x24xf32> to vector<6x24xf32>
    %cst_5 = arith.constant dense<0.000000e+00> : vector<6x256xf32>
    %8 = tpu.matmul %7, %5, %cst_5 {dimension_numbers = #tpu.dot_dimension_numbers<[1], [0], [0], [1], [0, 0, 1, 1], [], []>} : vector<6x24xf32>, vector<24x256xf32>, vector<6x256xf32> -> vector<6x256xf32>
    %9 = arith.addf %2, %8 : vector<6x256xf32>
    %c240_i32 = arith.constant 240 : i32
    %10 = tpu.dynamic_rotate %1 by %c240_i32 dim 1 : vector<8x256xf32>, i32 -> vector<8x256xf32>
    %c239_i32 = arith.constant 239 : i32
    %11 = tpu.dynamic_rotate %1 by %c239_i32 dim 1 : vector<8x256xf32>, i32 -> vector<8x256xf32>
    %c238_i32 = arith.constant 238 : i32
    %12 = tpu.dynamic_rotate %1 by %c238_i32 dim 1 : vector<8x256xf32>, i32 -> vector<8x256xf32>
    %13 = tpu.concatenate %10, %11, %12 in 0 : vector<8x256xf32>, vector<8x256xf32>, vector<8x256xf32> -> vector<24x256xf32>
    %c1 = arith.constant 1 : index
    %c0_6 = arith.constant 0 : index
    %c0_7 = arith.constant 0 : index
    %14 = vector.load %arg2[%c1, %c0_6, %c0_7] : memref<3x6x24xf32, #tpu.memory_space<vmem>>, vector<1x6x24xf32>
    %15 = vector.shape_cast %14 : vector<1x6x24xf32> to vector<6x24xf32>
    %cst_8 = arith.constant dense<0.000000e+00> : vector<6x256xf32>
    %16 = tpu.matmul %15, %13, %cst_8 {dimension_numbers = #tpu.dot_dimension_numbers<[1], [0], [0], [1], [0, 0, 1, 1], [], []>} : vector<6x24xf32>, vector<24x256xf32>, vector<6x256xf32> -> vector<6x256xf32>
    %17 = arith.addf %9, %16 : vector<6x256xf32>
    %c224_i32 = arith.constant 224 : i32
    %18 = tpu.dynamic_rotate %1 by %c224_i32 dim 1 : vector<8x256xf32>, i32 -> vector<8x256xf32>
    %c223_i32 = arith.constant 223 : i32
    %19 = tpu.dynamic_rotate %1 by %c223_i32 dim 1 : vector<8x256xf32>, i32 -> vector<8x256xf32>
    %c222_i32 = arith.constant 222 : i32
    %20 = tpu.dynamic_rotate %1 by %c222_i32 dim 1 : vector<8x256xf32>, i32 -> vector<8x256xf32>
    %21 = tpu.concatenate %18, %19, %20 in 0 : vector<8x256xf32>, vector<8x256xf32>, vector<8x256xf32> -> vector<24x256xf32>
    %c2 = arith.constant 2 : index
    %c0_9 = arith.constant 0 : index
    %c0_10 = arith.constant 0 : index
    %22 = vector.load %arg2[%c2, %c0_9, %c0_10] : memref<3x6x24xf32, #tpu.memory_space<vmem>>, vector<1x6x24xf32>
    %23 = vector.shape_cast %22 : vector<1x6x24xf32> to vector<6x24xf32>
    %cst_11 = arith.constant dense<0.000000e+00> : vector<6x256xf32>
    %24 = tpu.matmul %23, %21, %cst_11 {dimension_numbers = #tpu.dot_dimension_numbers<[1], [0], [0], [1], [0, 0, 1, 1], [], []>} : vector<6x24xf32>, vector<24x256xf32>, vector<6x256xf32> -> vector<6x256xf32>
    %25 = arith.addf %17, %24 : vector<6x256xf32>
    %c0_12 = arith.constant 0 : index
    %c0_13 = arith.constant 0 : index
    %c0_14 = arith.constant 0 : index
    %26 = vector.load %arg3[%c0_12, %c0_13, %c0_14] : memref<1x6x256xf32, #tpu.memory_space<vmem>>, vector<1x6x256xf32>
    %27 = vector.shape_cast %26 : vector<1x6x256xf32> to vector<6x256xf32>
    %28 = vector.shape_cast %25 : vector<6x256xf32> to vector<1x6x256xf32>
    tpu.vector_store %arg3[%c0_12, %c0_13, %c0_14], %28 {strides = array<i32>} : memref<1x6x256xf32, #tpu.memory_space<vmem>>, vector<1x6x256xf32>,
    return
  }
  func.func @transform_0(%arg0: i32) -> (i32, i32, i32) {
    %c0_i32 = arith.constant 0 : i32
    %c0_i32_0 = arith.constant 0 : i32
    %c0_i32_1 = arith.constant 0 : i32
    return %arg0, %c0_i32, %c0_i32_0 : i32, i32, i32
  }
  func.func @transform_1(%arg0: i32) -> (i32, i32, i32) {
    %c0_i32 = arith.constant 0 : i32
    %c0_i32_0 = arith.constant 0 : i32
    %c0_i32_1 = arith.constant 0 : i32
    %c0_i32_2 = arith.constant 0 : i32
    return %c0_i32, %c0_i32_0, %c0_i32_1 : i32, i32, i32
  }
  func.func @transform_2(%arg0: i32) -> (i32, i32, i32) {
    %c0_i32 = arith.constant 0 : i32
    %c0_i32_0 = arith.constant 0 : i32
    %c0_i32_1 = arith.constant 0 : i32
    return %arg0, %c0_i32, %c0_i32_0 : i32, i32, i32
  }
}

</mosaic_0001>

<bundles_post_ra>
// kernel: _conv2d_valid_pallas.1
= control target key start
LH: loop header
LB: loop body
LE: loop exit
PB: predicated region body
PF: predicated region fallthrough
CT: control target
= control target key end

     0   :  { %s599_s9 = smov 0   ;;  %s652_s0 = inlined_call_operand.vmem [shape: f32[2,8,256], index: 0, kind: input, shape index: {}]   ;;  %s653_s1 = inlined_call_operand.vmem [shape: f32[3,6,24], index: 1, kind: input, shape index: {}]   ;;  %s654_s2 = inlined_call_operand.vmem [shape: f32[2,6,256], index: 2, kind: output, shape index: {}]  }
   0x1 LB: > { %s491_s10 = sadd.s32 4294967295, %s573_s9   ;;  %p495_p0 = scmp.ge.s32.totalorder %s573_s9, 1  ;;  %s573_s9 = sphi %s599_s9, %s12_s9  }
   0x2   : > { %p112_p1 = scmp.lt.s32.totalorder %s573_s9, 3 }
   0x4   : > { %p113_p2 = pnand %p495_p0, %p112_p1 }
   0x5   : > { %p134_p3 = scmp.lt.s32.totalorder (!%p113_p2), %s491_s10, 1  ;;  %s575_s15 = smov (!%p113_p2), 126   ;;  %v577_v3 = vmov (!%p113_p2), 0.0   ;;  %v150_v4 = vlaneseq (!%p113_p2)  ;;  %vm186_vm4 = vcmask (!%p113_p2), 195584   ;;  %v162_v27 = vld [vmem:[%s653_s1] sm:$0x3f] (!%p113_p2) }
   0x6   : > { %116 = sbr.rel (%p113_p2) target bundleno = 373 (0x175), region = 28  ;;  %s576_s16 = smov (!%p113_p2), 127   ;;  %328 = vmatprep.mubr.f32.mxu0 (!%p113_p2), %v577_v3  ;;  %254 = vmatprep.mubr.f32.mxu1 (!%p113_p2), %v577_v3  ;;  %v500_v46 = vld [vmem:[%s653_s1 + $0x8] sm:$0x3f] (!%p113_p2)  ;;  %v503_v51 = vld [vmem:[%s653_s1 + $0x10] sm:$0x3f] (!%p113_p2) }
   0x7   : > { %s578_s17 = smov (!%p113_p2), 112   ;;  %s579_s18 = smov (!%p113_p2), 96   ;;  %v617_v5 = vand.u32 (!%p113_p2), 127, %v150_v4 }
   0x8   : > { %s580_s19 = smov (!%p113_p2), 111   ;;  %s581_s20 = smov (!%p113_p2), 110  }
   0x9   : > { %s582_s21 = smov (!%p113_p2), 95   ;;  %s583_s22 = smov (!%p113_p2), 94   ;;  %vm152_vm0 = vcmp.lt.s32.totalorder (!%p113_p2), %v617_v5, 127  ;;  %vm159_vm1 = vcmp.lt.s32.totalorder (!%p113_p2), %v617_v5, 126  ;;  %vm167_vm2 = vcmp.lt.s32.totalorder (!%p113_p2), %v617_v5, 112  ;;  %vm174_vm3 = vcmp.lt.s32.totalorder (!%p113_p2), %v617_v5, 111 }
   0xa   : > { %vm339_vm5 = vcmp.lt.s32.totalorder (!%p113_p2), %v617_v5, 96  ;;  %vm346_vm6 = vcmp.lt.s32.totalorder (!%p113_p2), %v617_v5, 95  ;;  %vm181_vm7 = vcmp.lt.s32.totalorder (!%p113_p2), %v617_v5, 110  ;;  %vm353_vm8 = vcmp.lt.s32.totalorder (!%p113_p2), %v617_v5, 94 }
   0xd   : > { %s656_s10 = smov (!%p134_p3, %s491_s10), 1 }
   0xe   : > { %s507_s11 = sshll.u32 %s656_s10, 4 }
   0xf   : > { %s138_s14 = scalar_lea.vmem %s652_s0, %s507_s11  ;;  %s143_s3 = scalar_lea.vmem %s654_s2, %s507_s11 }
  0x10   : > { %v144_v0 = vld [vmem:[%s138_s14] sm:$0xff]  ;;  %v145_v1 = vld [vmem:[%s138_s14 + $0x8] sm:$0xff] }
  0x11   : > { %v542_v2 = vpack.i.bf16 %v145_v1, %v144_v0  ;;  %157 = vrot.lane.b32.xlu1 %v145_v1, %s575_s15 }
  0x13   : > { %543 = vrot.lane.b32.xlu0 %v542_v2, %s576_s16 }
  0x15   : > { %548 = vrot.lane.b32.xlu1 %v542_v2, %s578_s17 }
  0x17   : > { %155 = vrot.lane.b32.xlu0 %v144_v0, %s575_s15 }
  0x19   : > { %558 = vrot.lane.b32.xlu1 %v542_v2, %s579_s18 }
  0x1b   : > { %553 = vrot.lane.b32.xlu0 %v542_v2, %s580_s19 }
  0x1d   : > { %177 = vrot.lane.b32.xlu1 %v144_v0, %s581_s20 }
  0x1f   : > { %563 = vrot.lane.b32.xlu0 %v542_v2, %s582_s21 }
  0x21   : > { %349 = vrot.lane.b32.xlu1 %v144_v0, %s583_s22 }
  0x23   : > { %179 = vrot.lane.b32.xlu0 %v145_v1, %s581_s20 }
  0x27   : > { %351 = vrot.lane.b32.xlu0 %v145_v1, %s583_s22 }
  0x83   : > { %v158_v6 = vpop.permute.xlu1 %157 }
  0x85   : > { %v544_v7 = vpop.permute.xlu0 %543 }
  0x86   : > { %v546_v8 = vunpack.i.h.bf16 %v544_v7  ;;  %v545_v9 = vunpack.i.l.bf16 %v544_v7 }
  0x87   : > { %v549_v10 = vpop.permute.xlu1 %548 }
  0x88   : > { %v154_v11 = vsel %vm152_vm0, %v546_v8, %v545_v9  ;;  %v153_v12 = vsel %vm152_vm0, %v545_v9, %v546_v8  ;;  %v551_v16 = vunpack.i.h.bf16 %v549_v10  ;;  %v550_v17 = vunpack.i.l.bf16 %v549_v10 }
  0x89   : > { %v156_v13 = vpop.permute.xlu0 %155  ;;  %v513_v14 = vpack.c.bf16 %v154_v11, %v145_v1  ;;  %v515_v15 = vpack.c.bf16 %v153_v12, %v144_v0 }
  0x8a   : > { %v161_v19 = vsel %vm159_vm1, %v158_v6, %v156_v13  ;;  %v169_v21 = vsel %vm167_vm2, %v551_v16, %v550_v17  ;;  %v168_v22 = vsel %vm167_vm2, %v550_v17, %v551_v16  ;;  %v160_v28 = vsel %vm159_vm1, %v156_v13, %v158_v6 }
  0x8b   : > { %514 = vmatprep.subr.bf16.mxu0 %v513_v14  ;;  %v559_v18 = vpop.permute.xlu1 %558 }
  0x8c   : > { %516 = vmatpush1.bf16.msra.mxu0 %v515_v15  ;;  %v561_v25 = vunpack.i.h.bf16 %v559_v18  ;;  %v560_v26 = vunpack.i.l.bf16 %v559_v18 }
  0x8d   : > { %v554_v20 = vpop.permute.xlu0 %553  ;;  %268 = vmatprep.subr.mxu0 %v161_v19 }
  0x8e   : > { %v556_v23 = vunpack.i.h.bf16 %v554_v20  ;;  %v555_v24 = vunpack.i.l.bf16 %v554_v20  ;;  %v340_v35 = vsel %vm339_vm5, %v560_v26, %v561_v25  ;;  %v341_v38 = vsel %vm339_vm5, %v561_v25, %v560_v26 }
  0x8f   : > { %v178_v34 = vpop.permute.xlu1 %177 }
  0x90   : > { %269 = vmatpush1.msra.mxu0 %v160_v28  ;;  %v176_v29 = vsel %vm174_vm3, %v556_v23, %v555_v24  ;;  %v175_v30 = vsel %vm174_vm3, %v555_v24, %v556_v23 }
  0x91   : > { %v564_v31 = vpop.permute.xlu0 %563  ;;  %v509_v32 = vpack.c.bf16 %v176_v29, %v169_v21  ;;  %v511_v33 = vpack.c.bf16 %v175_v30, %v168_v22  ;;  %502 = vmatmul.mubr.msk.f32.vlgmr.msra.gmra.mrb[0].mxu0 %vm186_vm4, %v162_v27 }
  0x92   : > { %v566_v36 = vunpack.i.h.bf16 %v564_v31  ;;  %v565_v37 = vunpack.i.l.bf16 %v564_v31  ;;  %425 = vmatprep.mubr.f32.mxu0 %v577_v3 }
  0x93   : > { %510 = vmatprep.subr.bf16.mxu1 %v509_v32  ;;  %v350_v47 = vpop.permute.xlu1 %349 }
  0x94   : > { %v347_v39 = vsel %vm346_vm6, %v565_v37, %v566_v36  ;;  %512 = vmatpush1.bf16.msra.mxu1 %v511_v33  ;;  %v348_v40 = vsel %vm346_vm6, %v566_v36, %v565_v37 }
  0x95   : > { %v519_v41 = vpack.c.bf16 %v347_v39, %v340_v35  ;;  %v180_v42 = vpop.permute.xlu0 %179  ;;  %v517_v43 = vpack.c.bf16 %v348_v40, %v341_v38 }
  0x96   : > { %v183_v44 = vsel %vm181_vm7, %v180_v42, %v178_v34  ;;  %v182_v45 = vsel %vm181_vm7, %v178_v34, %v180_v42 }
  0x97   : > { %194 = vmatprep.subr.mxu1 %v183_v44  ;;  %518 = vmatprep.subr.bf16.mxu0 %v517_v43 }
  0x98   : > { %195 = vmatpush1.msra.mxu1 %v182_v45  ;;  %520 = vmatpush1.bf16.msra.mxu0 %v519_v41 }
  0x99   : > { %v352_v48 = vpop.permute.xlu0 %351  ;;  %501 = vmatmul.mubr.msk.f32.vlgmr.msra.gmra.mrb[0].mxu1 %vm186_vm4, %v500_v46 }
  0x9a   : > { %v354_v49 = vsel %vm353_vm8, %v350_v47, %v352_v48  ;;  %v355_v50 = vsel %vm353_vm8, %v352_v48, %v350_v47 }
  0x9b   : > { %365 = vmatprep.subr.mxu0 %v355_v50 }
  0x9c   : > { %366 = vmatpush1.msra.mxu0 %v354_v49 }
  0x9d   : > { %504 = vmatmul.mubr.msk.f32.vlgmr.msra.gmra.mrb[0].mxu0 %vm186_vm4, %v503_v51 }
 0x16c   : > { %v256_v52 = vpop.f32.mrb[0].mxu1 }
 0x16d   : > { %v258_v53 = vpop.f32.mrb[1].mxu1 }
 0x170   : > { %v427_v54 = vpop.f32.mrb[0].mxu0 }
 0x171   : > { %v521_v55 = vadd.f32 %v427_v54, %v256_v52  ;;  %v429_v56 = vpop.f32.mrb[1].mxu0 }
 0x172   : > { %v522_v57 = vadd.f32 %v429_v56, %v258_v53 }
 0x173   : > { %434 = vst [vmem:[%s143_s3] sm:$0x3f] %v521_v55 }
 0x174   : > { %435 = vst [vmem:[%s143_s3 + $0x8] sm:$0x3f] %v522_v57 }
 0x175 PF: > { %s12_s9 = sadd.s32 1, %s573_s9  }
 0x176   : > { %p9_p4 = scmp.ge.s32.totalorder %s12_s9, 4  }
 0x178   :  { %11 = sbr.rel (!%p9_p4) target bundleno = 1 (0x1), region = 60 }

</bundles_post_ra>
